<compile_context>
chip_gen: v7x
topology: tpu7x:2x2x1
jax: 0.10.0
libtpu: 0.0.40
codegen_flags: <defaults>
</compile_context>

<pallas_src>
import functools

import jax
import jax.numpy as jnp
from jax.experimental import pallas as pl
from jax.experimental.pallas import tpu as pltpu

_LANES = 128
_SUBLANES = 8
_TARGET_TILE_ROWS = 2048            # 2048 x 128 f32 = 1 MiB per input block
_VMEM_LIMIT_BYTES = 32 * 1024 * 1024


def _num_tensorcores():
    """TensorCores per chip: 2 on v7x, 1 on v5e/v6e (safe fallback: 1)."""
    try:
        kind = jax.devices()[0].device_kind.lower()
    except Exception:
        return 1
    return 2 if ("v7" in kind or "7x" in kind) else 1


def _sublane_multiple(dtype):
    """Second-minor tile multiple for a dtype: 8 (f32), 16 (bf16), 32 (int8/bool)."""
    itemsize = jnp.dtype(dtype).itemsize
    return _SUBLANES * max(1, 4 // max(1, itemsize))


def _pow_gamma(x, gamma):
    """x ** gamma, using VPU multiplies for small integer gamma (EUP-free)."""
    ig = int(gamma)
    if float(ig) == float(gamma) and 0 <= ig <= 8:
        if ig == 0:
            return jnp.ones_like(x)
        r = x
        for _ in range(ig - 1):
            r = r * x
        return r
    return x ** gamma  # non-integer gamma: pay the transcendental pow


def _focal_sum_kernel(p_ref, t_ref, o_ref, *, gamma, k1, k2, rows_valid,
                      tile_rows, steps_per_split, mask_needed):
    c = pl.program_id(0)   # "parallel" split (one per TensorCore on v7x)
    j = pl.program_id(1)   # reduction steps within the split

    @pl.when(j == 0)
    def _():
        o_ref[...] = jnp.zeros_like(o_ref)

    p = p_ref[...]
    if p.dtype != jnp.float32:        # trace-time: no-op cast skipped for f32
        p = p.astype(jnp.float32)
    p = jnp.clip(p, 0.001, 0.999)
    t = t_ref[...]
    if t.dtype != jnp.float32:
        t = t.astype(jnp.float32)
    one_m_p = 1.0 - p

    # Kernel computes   k1*(1-p)^g*(t*log p) + k2*p^g*((1-t)*log(1-p));
    # for alpha != 0: k1 = 1, k2 = (1-alpha)/alpha and the wrapper multiplies
    # the summed partials by -alpha (one fewer VPU op/elem, negation folded).
    term1 = _pow_gamma(one_m_p, gamma) * (t * jnp.log(p))
    term2 = _pow_gamma(p, gamma) * ((1.0 - t) * jnp.log(one_m_p))
    if k1 == 1.0:
        inner = term1 + k2 * term2
    else:
        inner = k1 * term1 + k2 * term2

    def accumulate(vals):
        # Sum groups of 8 rows on top of each other: pure vreg (VPU) adds into
        # the resident (8,128) output block.  The single cross-lane reduce
        # happens once, on the tiny partials output, in the wrapper.
        o_ref[...] += vals.reshape(-1, _SUBLANES, _LANES).sum(axis=0)

    if mask_needed:
        row_start = (c * steps_per_split + j) * tile_rows
        tile_is_full = row_start + tile_rows <= rows_valid

        @pl.when(tile_is_full)
        def _():
            accumulate(inner)

        @pl.when(jnp.logical_not(tile_is_full))
        def _():
            # Only tiles touching the ragged / over-provisioned tail pay this.
            row = row_start + jax.lax.broadcasted_iota(jnp.int32, inner.shape, 0)
            accumulate(jnp.where(row < rows_valid, inner, 0.0))
    else:
        accumulate(inner)


def focal_loss(inputs, targets, gamma=2.0, alpha=0.25):
    """Pallas TPU implementation of FocalLoss.forward -> scalar mean loss."""
    assert inputs.shape == targets.shape
    n_valid = int(inputs.size)
    assert n_valid > 0, "FocalLoss of an empty tensor is undefined (0/0)."

    gamma = float(gamma)
    alpha = float(alpha)
    if alpha != 0.0:
        out_scale = -alpha
        k1, k2 = 1.0, (1.0 - alpha) / alpha
    else:  # degenerate alpha: don't fold (avoid divide-by-zero in the ratio)
        out_scale = 1.0
        k1, k2 = -alpha, -(1.0 - alpha)

    p_flat = jnp.ravel(inputs)   # reshape of a contiguous array: free in XLA
    t_flat = jnp.ravel(targets)

    # Alignment so the 2-D view is layout-clean for both dtypes (f32:8 rows,
    # bf16:16, int8/bool:32 second-minor multiples).
    row_align = max(_sublane_multiple(p_flat.dtype),
                    _sublane_multiple(t_flat.dtype))
    align_elems = row_align * _LANES
    n_main = (n_valid // align_elems) * align_elems

    # Tiny unaligned tail (< one aligned row-group): plain jnp, no full-array
    # pad/copy of the inputs.
    tail_sum = jnp.float32(0.0)
    if n_main != n_valid:
        p_t = jnp.clip(p_flat[n_main:].astype(jnp.float32), 0.001, 0.999)
        t_t = t_flat[n_main:].astype(jnp.float32)
        tail_sum = jnp.sum(
            (-alpha) * _pow_gamma(1.0 - p_t, gamma) * (t_t * jnp.log(p_t))
            - (1.0 - alpha) * _pow_gamma(p_t, gamma)
            * ((1.0 - t_t) * jnp.log(1.0 - p_t)))

    if n_main == 0:
        # Whole input is smaller than one aligned tile: the jnp tail covers it.
        return tail_sum / jnp.float32(n_valid)

    rows_main = n_main // _LANES
    if n_main == n_valid:
        p_main, t_main = p_flat, t_flat          # zero-copy fast path
    else:
        # TODO(synk): a manual-DMA (memory_space=pl.ANY) path would avoid this
        # prefix-slice copy entirely for non-aligned sizes.
        p_main, t_main = p_flat[:n_main], t_flat[:n_main]
    p2d = p_main.reshape(rows_main, _LANES)
    t2d = t_main.reshape(rows_main, _LANES)

    tile_rows = min(_TARGET_TILE_ROWS, rows_main)  # multiple of row_align
    steps_needed = pl.cdiv(rows_main, tile_rows)
    num_splits = max(1, min(_num_tensorcores(), steps_needed))
    steps_per_split = pl.cdiv(steps_needed, num_splits)
    # Compile-time: can any grid step contain non-valid rows?
    mask_needed = (num_splits * steps_per_split * tile_rows) != rows_main

    def block_index(c, j):
        # Clamp so an over-provisioned final step re-reads the last real block
        # instead of stepping past the array; its contribution is masked to 0.
        return (jnp.minimum(c * steps_per_split + j, steps_needed - 1), 0)

    kernel = functools.partial(
        _focal_sum_kernel,
        gamma=gamma, k1=k1, k2=k2,
        rows_valid=rows_main, tile_rows=tile_rows,
        steps_per_split=steps_per_split, mask_needed=mask_needed)

    bytes_accessed = int(
        n_main * (p2d.dtype.itemsize + t2d.dtype.itemsize)
        + num_splits * _SUBLANES * _LANES * 4)
    cost = pl.CostEstimate(flops=13 * n_main,
                           transcendentals=2 * n_main,
                           bytes_accessed=bytes_accessed)

    partials = pl.pallas_call(
        kernel,
        out_shape=jax.ShapeDtypeStruct((num_splits * _SUBLANES, _LANES),
                                       jnp.float32),
        grid_spec=pltpu.PrefetchScalarGridSpec(
            num_scalar_prefetch=0,
            grid=(num_splits, steps_per_split),
            in_specs=[
                pl.BlockSpec((tile_rows, _LANES), block_index),
                pl.BlockSpec((tile_rows, _LANES), block_index),
            ],
            out_specs=pl.BlockSpec((_SUBLANES, _LANES), lambda c, j: (c, 0)),
        ),
        compiler_params=pltpu.CompilerParams(
            dimension_semantics=("parallel", "arbitrary"),
            vmem_limit_bytes=_VMEM_LIMIT_BYTES,
        ),
        cost_estimate=cost,
    )(p2d, t2d)

    # Single tiny cross-lane reduce + alpha fold-back + mean, outside the kernel.
    main_sum = jnp.sum(partials) * jnp.float32(out_scale)
    return (main_sum + tail_sum) / jnp.float32(n_valid)


def _focal_loss_ref(inputs, targets, gamma=2.0, alpha=0.25):
    p = jnp.clip(inputs.astype(jnp.float32), 0.001, 0.999)
    t = targets.astype(jnp.float32)
    loss = (
        -alpha * (1.0 - p) ** gamma * (t * jnp.log(p))
        - (1.0 - alpha) * p ** gamma * ((1.0 - t) * jnp.log(1.0 - p))
    )
    return jnp.mean(loss)


if __name__ == "__main__":
    key = jax.random.PRNGKey(0)
    k1, k2 = jax.random.split(key)

    # NCHW "probability map" style inputs, as implied by the FPN training loop.
    x = jax.random.uniform(k1, (2, 4, 16, 16), dtype=jnp.float32)
    target = (jax.random.uniform(k2, (2, 4, 16, 16)) > 0.5).astype(jnp.float32)

    out = focal_loss(x, target)
    out = jax.block_until_ready(out)

    ref = _focal_loss_ref(x, target)
    assert jnp.allclose(out, ref, rtol=1e-5, atol=1e-6), (out, ref)

    print("KERNEL_OK")
</pallas_src>

<mosaic_0001>
module attributes {stable_mosaic.version = 11 : i64} {
  func.func @_focal_sum_kernel(%arg0: i32, %arg1: i32, %arg2: memref<16x128xf32, #tpu.memory_space<vmem>>, %arg3: memref<16x128xf32, #tpu.memory_space<vmem>>, %arg4: memref<8x128xf32, #tpu.memory_space<vmem>>) attributes {dimension_semantics = [#tpu.dimension_semantics<parallel>, #tpu.dimension_semantics<arbitrary>], iteration_bounds = array<i64: 1, 1>, scalar_prefetch = 0 : i64, scratch_operands = 0 : i64, tpu.core_type = #tpu.core_type<tc>, window_params = [{transform_indices = @transform_0, window_bounds = array<i64: 16, 128>}, {transform_indices = @transform_1, window_bounds = array<i64: 16, 128>}, {transform_indices = @transform_2, window_bounds = array<i64: 8, 128>}]} {
    %c0_i32 = arith.constant 0 : i32
    %0 = arith.cmpi eq, %arg1, %c0_i32 : i32
    %1 = arith.extui %0 : i1 to i32
    %c0_i32_0 = arith.constant 0 : i32
    %2 = arith.cmpi ne, %1, %c0_i32_0 : i32
    scf.if %2 {
      %cst_13 = arith.constant 0.000000e+00 : f32
      %29 = vector.broadcast %cst_13 : f32 to vector<8x128xf32>
      %c0_14 = arith.constant 0 : index
      %c0_15 = arith.constant 0 : index
      %30 = vector.load %arg4[%c0_14, %c0_15] : memref<8x128xf32, #tpu.memory_space<vmem>>, vector<8x128xf32>
      tpu.vector_store %arg4[%c0_14, %c0_15], %29 {strides = array<i32>} : memref<8x128xf32, #tpu.memory_space<vmem>>, vector<8x128xf32>,
    } else {
    }
    %c0 = arith.constant 0 : index
    %c0_1 = arith.constant 0 : index
    %3 = vector.load %arg2[%c0, %c0_1] : memref<16x128xf32, #tpu.memory_space<vmem>>, vector<16x128xf32>
    %cst = arith.constant 1.000000e-03 : f32
    %cst_2 = arith.constant 9.990000e-01 : f32
    %4 = vector.broadcast %cst : f32 to vector<16x128xf32>
    %5 = arith.maximumf %4, %3 : vector<16x128xf32>
    %6 = vector.broadcast %cst_2 : f32 to vector<16x128xf32>
    %7 = arith.minimumf %6, %5 : vector<16x128xf32>
    %c0_3 = arith.constant 0 : index
    %c0_4 = arith.constant 0 : index
    %8 = vector.load %arg3[%c0_3, %c0_4] : memref<16x128xf32, #tpu.memory_space<vmem>>, vector<16x128xf32>
    %cst_5 = arith.constant 1.000000e+00 : f32
    %9 = vector.broadcast %cst_5 : f32 to vector<16x128xf32>
    %10 = arith.subf %9, %7 : vector<16x128xf32>
    %11 = arith.mulf %10, %10 : vector<16x128xf32>
    %12 = math.log %7 : vector<16x128xf32>
    %13 = arith.mulf %8, %12 : vector<16x128xf32>
    %14 = arith.mulf %11, %13 : vector<16x128xf32>
    %15 = arith.mulf %7, %7 : vector<16x128xf32>
    %cst_6 = arith.constant 1.000000e+00 : f32
    %16 = vector.broadcast %cst_6 : f32 to vector<16x128xf32>
    %17 = arith.subf %16, %8 : vector<16x128xf32>
    %18 = math.log %10 : vector<16x128xf32>
    %19 = arith.mulf %17, %18 : vector<16x128xf32>
    %20 = arith.mulf %15, %19 : vector<16x128xf32>
    %cst_7 = arith.constant 3.000000e+00 : f32
    %21 = vector.broadcast %cst_7 : f32 to vector<16x128xf32>
    %22 = arith.mulf %21, %20 : vector<16x128xf32>
    %23 = arith.addf %14, %22 : vector<16x128xf32>
    %c0_8 = arith.constant 0 : index
    %c0_9 = arith.constant 0 : index
    %24 = vector.load %arg4[%c0_8, %c0_9] : memref<8x128xf32, #tpu.memory_space<vmem>>, vector<8x128xf32>
    %25 = vector.shape_cast %23 : vector<16x128xf32> to vector<2x8x128xf32>
    %cst_10 = arith.constant dense<0.000000e+00> : vector<8x128xf32>
    %26 = vector.multi_reduction <add>, %25, %cst_10 [0] : vector<2x8x128xf32> to vector<8x128xf32>
    %27 = arith.addf %24, %26 : vector<8x128xf32>
    %c0_11 = arith.constant 0 : index
    %c0_12 = arith.constant 0 : index
    %28 = vector.load %arg4[%c0_11, %c0_12] : memref<8x128xf32, #tpu.memory_space<vmem>>, vector<8x128xf32>
    tpu.vector_store %arg4[%c0_11, %c0_12], %27 {strides = array<i32>} : memref<8x128xf32, #tpu.memory_space<vmem>>, vector<8x128xf32>,
    return
  }
  func.func @transform_0(%arg0: i32, %arg1: i32) -> (i32, i32) {
    %c1_i32 = arith.constant 1 : i32
    %0 = arith.muli %arg0, %c1_i32 : i32
    %1 = arith.addi %0, %arg1 : i32
    %c0_i32 = arith.constant 0 : i32
    %2 = arith.minsi %1, %c0_i32 : i32
    %c0_i32_0 = arith.constant 0 : i32
    %c0_i32_1 = arith.constant 0 : i32
    return %2, %c0_i32_0 : i32, i32
  }
  func.func @transform_1(%arg0: i32, %arg1: i32) -> (i32, i32) {
    %c1_i32 = arith.constant 1 : i32
    %0 = arith.muli %arg0, %c1_i32 : i32
    %1 = arith.addi %0, %arg1 : i32
    %c0_i32 = arith.constant 0 : i32
    %2 = arith.minsi %1, %c0_i32 : i32
    %c0_i32_0 = arith.constant 0 : i32
    %c0_i32_1 = arith.constant 0 : i32
    return %2, %c0_i32_0 : i32, i32
  }
  func.func @transform_2(%arg0: i32, %arg1: i32) -> (i32, i32) {
    %c0_i32 = arith.constant 0 : i32
    %c0_i32_0 = arith.constant 0 : i32
    return %arg0, %c0_i32 : i32, i32
  }
}

</mosaic_0001>

<bundles_post_ra>
// kernel: tpu_custom_call.1
= control target key start
LH: loop header
LB: loop body
LE: loop exit
PB: predicated region body
PF: predicated region fallthrough
CT: control target
= control target key end

     0   :  { %7 = vsyncpa [#allocation3], 0  ;;  %s267_s0 = inlined_call_operand.hbm [shape: f32[16,128], index: 0, kind: input, shape index: {}]   ;;  %s268_s1 = inlined_call_operand.hbm [shape: f32[16,128], index: 1, kind: input, shape index: {}]   ;;  %s269_s2 = inlined_call_operand.hbm [shape: f32[8,128], index: 2, kind: output, shape index: {}]  }
   0x1   :  { %8 = vsyncpa [#allocation6], 0 }
   0x2   :  { %9 = vsyncpa [#allocation4], 0  ;;  %s211_s9 = smov [#allocation2]   ;;  %s139_s13 = scalar_lea.hbm %s267_s0, 256 }
   0x3   :  { %s21_s10 = sshll.u32 %s211_s9, 4  ;;  %p140_p0 = scmp.ne.s32.totalorder %s267_s0, %s139_s13  ;;  %s22_s10 = int_to_ptr.vmem [resolvable:$true] %s21_s10 }
   0x4   :  { %p143_p1 = scmp.lt.u32.totalorder %s139_s13, %s267_s0 }
   0x6   :  { %p145_p2 = pnand %p143_p1, %p140_p0 }
   0x8   :  { %148 = shalt.err (!%p145_p2)
}
   0x9   :  { %s149_s18 = scalar_lea.vmem %s22_s10, 256  ;;  %p154_p4 = scmp.lt.s32.totalorder %s22_s10, %s22_s10 }
   0xa   :  { %p150_p3 = scmp.ne.s32.totalorder %s22_s10, %s149_s18  ;;  %p155_p5 = scmp.lt.s32.totalorder %s149_s18, %s149_s18 }
   0xc   :  { %p156_p6 = por %p155_p5, %p154_p4 }
   0xe   :  { %p157_p7 = pnand %p156_p6, %p150_p3 }
  0x10   :  { %160 = shalt.err (!%p157_p7)
}
  0x11   :  { %s212_s19 = smov 128   ;;  %s213_s20 = smov 8  }
  0x12   :  { %27 = dma.hbm_to_vmem [thread:$0]  %s267_s0, 256, %s22_s10, [#allocation3], %s212_s19, %s212_s19, %s213_s20  }
  0x13   :  { %s214_s23 = smov [#allocation5]   ;;  %s161_s27 = scalar_lea.hbm %s268_s1, 256 }
  0x14   :  { %s39_s24 = sshll.u32 %s214_s23, 4  ;;  %p162_p8 = scmp.ne.s32.totalorder %s268_s1, %s161_s27  ;;  %s40_s24 = int_to_ptr.vmem [resolvable:$true] %s39_s24 }
  0x15   :  { %p165_p9 = scmp.lt.u32.totalorder %s161_s27, %s268_s1 }
  0x17   :  { %p167_p10 = pnand %p165_p9, %p162_p8 }
  0x19   :  { %170 = shalt.err (!%p167_p10)
}
  0x1a   :  { %s171_s4 = scalar_lea.vmem %s40_s24, 256  ;;  %p176_p12 = scmp.lt.s32.totalorder %s40_s24, %s40_s24 }
  0x1b   :  { %p172_p11 = scmp.ne.s32.totalorder %s40_s24, %s171_s4  ;;  %p177_p13 = scmp.lt.s32.totalorder %s171_s4, %s171_s4 }
  0x1d   :  { %p178_p0 = por %p177_p13, %p176_p12 }
  0x1f   :  { %p179_p1 = pnand %p178_p0, %p172_p11 }
  0x21   :  { %182 = shalt.err (!%p179_p1)
}
  0x22   :  { %45 = dma.hbm_to_vmem [thread:$0]  %s268_s1, 256, %s40_s24, [#allocation6], %s212_s19, %s212_s19, %s213_s20  }
  0x23   :  { %205 = dma.done.wait [#allocation3], 256  }
  0x24   :  { %206 = vsyncadd [#allocation3], 4294967040 }
  0x25   :  { %207 = dma.done.wait [#allocation6], 256  }
  0x26   :  { %208 = vsyncadd [#allocation6], 4294967040  ;;  %v65_v0 = vld [vmem:[#allocation2] sm:$0xff]  ;;  %v66_v1 = vld [vmem:[#allocation2 + $0x8] sm:$0xff]  ;;  %s215_s1 = smov [#allocation7]  }
  0x27   :  { %v67_v2 = vmax.f32 %v65_v0, 0.001  ;;  %v68_v3 = vmax.f32 %v66_v1, 0.001  ;;  %v71_v8 = vld [vmem:[#allocation5] sm:$0xff]  ;;  %v72_v9 = vld [vmem:[#allocation5 + $0x8] sm:$0xff] }
  0x28   :  { %v87_v13 = vsub.f32 1.0, %v71_v8  ;;  %v88_v16 = vsub.f32 1.0, %v72_v9  ;;  %s111_s6 = sshll.u32 %s215_s1, 4  ;;  %s112_s6 = int_to_ptr.vmem [resolvable:$true] %s111_s6 }
  0x29   :  { %v69_v4 = vmin.f32 %v67_v2, 0.999  ;;  %v70_v5 = vmin.f32 %v68_v3, 0.999  ;;  %s183_s7 = scalar_lea.vmem %s112_s6, 128  ;;  %p188_p3 = scmp.lt.s32.totalorder %s112_s6, %s112_s6 }
  0x2a   :  { %p184_p2 = scmp.ne.s32.totalorder %s112_s6, %s183_s7  ;;  %p189_p4 = scmp.lt.s32.totalorder %s183_s7, %s183_s7 }
  0x2b   :  { %v73_v6 = vsub.f32 1.0, %v69_v4  ;;  %v74_v7 = vsub.f32 1.0, %v70_v5  ;;  %131 = vlog2.f32 %v69_v4  ;;  %v85_v20 = vmul.f32 %v69_v4, %v69_v4 }
  0x2c   :  { %133 = vlog2.f32 %v70_v5  ;;  %v86_v24 = vmul.f32 %v70_v5, %v70_v5  ;;  %p190_p5 = por %p189_p4, %p188_p3 }
  0x2d   :  { %135 = vlog2.f32 %v73_v6  ;;  %v75_v18 = vmul.f32 %v73_v6, %v73_v6  ;;  %v76_v22 = vmul.f32 %v74_v7, %v74_v7 }
  0x2e   :  { %137 = vlog2.f32 %v74_v7  ;;  %p191_p6 = pnand %p190_p5, %p184_p2 }
  0x35   :  { %v132_v10 = vpop.eup %131 }
  0x36   :  { %v134_v11 = vpop.eup %133  ;;  %v78_v12 = vmul.f32 0.6931472, %v132_v10 }
  0x37   :  { %v136_v14 = vpop.eup %135  ;;  %v80_v15 = vmul.f32 0.6931472, %v134_v11 }
  0x38   :  { %v138_v17 = vpop.eup %137  ;;  %v81_v19 = vmul.f32 %v78_v12, %v71_v8  ;;  %v90_v21 = vmul.f32 0.6931472, %v136_v14 }
  0x39   :  { %v82_v23 = vmul.f32 %v80_v15, %v72_v9  ;;  %v92_v25 = vmul.f32 0.6931472, %v138_v17 }
  0x3a   :  { %v93_v26 = vmul.f32 %v90_v21, %v87_v13  ;;  %v83_v28 = vmul.f32 %v81_v19, %v75_v18 }
  0x3b   :  { %v94_v27 = vmul.f32 %v92_v25, %v88_v16  ;;  %v84_v30 = vmul.f32 %v82_v23, %v76_v22 }
  0x3c   :  { %v95_v29 = vmul.f32 %v93_v26, %v85_v20 }
  0x3d   :  { %v96_v31 = vmul.f32 %v94_v27, %v86_v24 }
  0x3e   :  { %v97_v32 = vmul.f32 3.0, %v95_v29 }
  0x3f   :  { %v98_v33 = vmul.f32 3.0, %v96_v31 }
  0x40   :  { %v99_v34 = vadd.f32 %v97_v32, %v83_v28 }
  0x41   :  { %v100_v35 = vadd.f32 %v98_v33, %v84_v30 }
  0x43   :  { %v102_v36 = vadd.f32 %v100_v35, %v99_v34 }
  0x45   :  { %104 = vst [vmem:[#allocation7] sm:$0xff] %v102_v36 }
  0x46   :  { %194 = shalt.err (!%p191_p6)
}
  0x47   :  { %s195_s10 = scalar_lea.hbm %s269_s2, 128 }
  0x48   :  { %p196_p7 = scmp.ne.s32.totalorder %s269_s2, %s195_s10  ;;  %p199_p8 = scmp.lt.u32.totalorder %s195_s10, %s269_s2 }
  0x4a   :  { %p201_p9 = pnand %p199_p8, %p196_p7 }
  0x4c   :  { %204 = shalt.err (!%p201_p9)
}
  0x4d   :  { %114 = dma.vmem_to_hbm [thread:$0]  %s112_s6, 128, %s269_s2, [#allocation4]  }
  0x4e   :  { %209 = dma.done.wait [#allocation4], 128  }
  0x4f   :  { %210 = vsyncadd [#allocation4], 4294967168 }
  0x50   :  { %118 = vsyncpa [#allocation3], 1 }
  0x51   :  { %119 = vsyncpa [#allocation6], 1 }
  0x52   :  { %120 = vsyncpa [#allocation4], 1 }

</bundles_post_ra>
